<compile_context>
chip_gen: v6e
topology: v6e:2x2x1
jax: 0.10.0
libtpu: 0.0.40
codegen_flags: <defaults>
</compile_context>

<pallas_src>
import functools
import math

import jax
import jax.numpy as jnp
from jax.experimental import pallas as pl
from jax.experimental.pallas import tpu as pltpu

LANE = 128  # TPU vreg lane width


# ----------------------------------------------------------------------------- kernels
def _gwl_kernel(x_ref, wsel_ref, b_ref, o_ref):
    # x_ref:    (block_b, block_k)   activations tile (batch x flattened C*D chunk)
    # wsel_ref: (block_k, C_pad)     W folded into the segment-selection matrix
    # b_ref:    (1, C_pad)           zero-padded bias
    # o_ref:    (block_b, C_pad)     lane-dense f32 output; accumulator across k
    @pl.when(pl.program_id(1) == 0)
    def _():
        o_ref[...] = jnp.zeros_like(o_ref) + b_ref[...]
    o_ref[...] += jnp.dot(x_ref[...], wsel_ref[...],
                          preferred_element_type=jnp.float32)


def _gwl_kernel_nobias(x_ref, wsel_ref, o_ref):
    @pl.when(pl.program_id(1) == 0)
    def _():
        o_ref[...] = jnp.zeros_like(o_ref)
    o_ref[...] += jnp.dot(x_ref[...], wsel_ref[...],
                          preferred_element_type=jnp.float32)


# ----------------------------------------------------------------------------- helpers
def _num_tensorcores():
    try:
        dev = jax.devices()[0]
        return int(getattr(dev, "num_cores", 1) or 1)
    except Exception:
        return 1


# ----------------------------------------------------------------------------- wrapper
def groupwise_linear(x, W, b=None, *, block_b=None, block_k=None,
                     compute_dtype=jnp.float32,
                     vmem_budget_bytes=8 * 1024 * 1024):
    """GroupWiseLinear: out[n, c] = sum_d W[c, d] * x[n, c, d] (+ b[c]).

    x: (B, C, D), W: (C, D), b: (C,) or None.  Returns (B, C) float32.
    """
    B, C, D = x.shape
    assert W.shape == (C, D)
    CD = C * D
    C_pad = pl.cdiv(C, LANE) * LANE                     # lane-dense output width
    itemsize = jnp.dtype(compute_dtype).itemsize

    # ---- batch tiling: biggest tile that divides B (no batch padding, ever) ----
    if block_b is None:
        block_b = B
        # v7x-style 2-TensorCore chips: give the "parallel" axis >= 2 grid steps.
        if _num_tensorcores() >= 2 and B >= 16 and B % 16 == 0:
            block_b = B // 2
    block_b = min(int(block_b), B)
    if block_b < B:
        block_b = max(8, (block_b // 8) * 8)            # sublane-aligned tiles
    if block_b >= B or B % block_b != 0:
        block_b = B                                     # fall back: single full tile
    nb = B // block_b

    # ---- reduction (K = C*D) tiling: only when Wsel would not fit the budget ----
    if block_k is None:
        if 2 * CD * C_pad * itemsize <= vmem_budget_bytes:
            block_k = CD                                # single full-K block
        else:
            bk = vmem_budget_bytes // (2 * itemsize * (block_b + C_pad))
            block_k = max(LANE, (bk // LANE) * LANE)
    block_k = int(block_k)
    if block_k >= CD:
        block_k, K_pad = CD, CD
    else:
        block_k = max(LANE, (block_k // LANE) * LANE)   # (8,128)-legal K tiles
        K_pad = pl.cdiv(CD, block_k) * block_k
    nk = K_pad // block_k

    # ---- wrapper-side layout plumbing only (no per-element compute hoisted) ----
    x2 = x.reshape(B, CD).astype(compute_dtype)
    if K_pad != CD:
        x2 = jnp.pad(x2, ((0, 0), (0, K_pad - CD)))

    # Wsel[c*D + d, c] = W[c, d]; zero elsewhere (and in the K / C padding).
    row = jnp.arange(K_pad, dtype=jnp.int32)
    col = jnp.arange(C_pad, dtype=jnp.int32)
    sel = (row[:, None] // D == col[None, :]) & (row[:, None] < CD)
    w_flat = jnp.pad(W.reshape(CD).astype(jnp.float32), (0, K_pad - CD))
    wsel = jnp.where(sel, w_flat[:, None], 0.0).astype(compute_dtype)

    in_specs = [
        pl.BlockSpec((block_b, block_k), lambda i, k: (i, k)),   # activations
        pl.BlockSpec((block_k, C_pad), lambda i, k: (k, 0)),     # folded weights
    ]
    args = [x2, wsel]
    if b is not None:
        b2 = jnp.pad(b.reshape(1, C).astype(jnp.float32), ((0, 0), (0, C_pad - C)))
        in_specs.append(pl.BlockSpec((1, C_pad), lambda i, k: (0, 0)))
        args.append(b2)
        kernel = _gwl_kernel
    else:
        kernel = _gwl_kernel_nobias

    cost = pl.CostEstimate(
        flops=2 * B * K_pad * C_pad,
        transcendentals=0,
        bytes_accessed=(B * K_pad + K_pad * C_pad) * itemsize
                       + (B * C_pad + (C_pad if b is not None else 0)) * 4,
    )

    out = pl.pallas_call(
        kernel,
        out_shape=jax.ShapeDtypeStruct((B, C_pad), jnp.float32),
        grid=(nb, nk),
        in_specs=in_specs,
        out_specs=pl.BlockSpec((block_b, C_pad), lambda i, k: (i, 0)),
        compiler_params=pltpu.CompilerParams(
            dimension_semantics=("parallel", "arbitrary"),
            vmem_limit_bytes=32 * 1024 * 1024,
        ),
        cost_estimate=cost,
    )(*args)

    return out[:, :C]                                   # slice away lane padding (glue)


# ----------------------------------------------------------------------------- main
if __name__ == "__main__":
    key = jax.random.PRNGKey(0)
    kx, kw, kb, kx2, kw2, kx3, kw3 = jax.random.split(key, 7)

    # config 1: module-implied shapes (batch=2, num_class=6, hidden_dim=32), bias
    B, C, D = 2, 6, 32
    stdv = 1.0 / math.sqrt(D)
    x = jax.random.normal(kx, (B, C, D), dtype=jnp.float32)
    W = jax.random.uniform(kw, (C, D), jnp.float32, -stdv, stdv)   # reset_parameters
    b = jax.random.uniform(kb, (C,), jnp.float32, -stdv, stdv)

    out = jax.block_until_ready(jax.jit(groupwise_linear)(x, W, b))
    ref = jnp.sum(x * W[None, :, :], axis=-1) + b[None, :]
    assert out.shape == (B, C)
    assert bool(jnp.all(jnp.isfinite(out)))
    # DEFAULT MXU precision rounds operands to bf16 (~1e-3 rel); tolerance covers it
    assert bool(jnp.allclose(out, ref, atol=1e-2, rtol=1e-2))

    # config 2: bias=False, multi-step "parallel" batch grid + tiled reduction axis
    B2, C2, D2 = 16, 10, 64
    stdv2 = 1.0 / math.sqrt(D2)
    x_big = jax.random.normal(kx2, (B2, C2, D2), dtype=jnp.float32)
    W_big = jax.random.uniform(kw2, (C2, D2), jnp.float32, -stdv2, stdv2)
    gwl_tiled = jax.jit(functools.partial(groupwise_linear, block_b=8, block_k=128))
    out2 = jax.block_until_ready(gwl_tiled(x_big, W_big))
    ref2 = jnp.sum(x_big * W_big[None, :, :], axis=-1)
    assert out2.shape == (B2, C2)
    assert bool(jnp.allclose(out2, ref2, atol=1e-2, rtol=1e-2))

    # config 3: bf16 activations/weights (kernel is MXU-only, so v5e-safe too)
    B3, C3, D3 = 8, 6, 32
    stdv3 = 1.0 / math.sqrt(D3)
    x_bf = jax.random.normal(kx3, (B3, C3, D3), dtype=jnp.float32)
    W_bf = jax.random.uniform(kw3, (C3, D3), jnp.float32, -stdv3, stdv3)
    gwl_bf16 = jax.jit(functools.partial(groupwise_linear, compute_dtype=jnp.bfloat16))
    out3 = jax.block_until_ready(gwl_bf16(x_bf, W_bf))
    ref3 = jnp.sum(x_bf * W_bf[None, :, :], axis=-1)
    assert out3.shape == (B3, C3)
    assert bool(jnp.allclose(out3, ref3, atol=3e-2, rtol=3e-2))

    print("KERNEL_OK")
</pallas_src>

<mosaic_0001>
module attributes {stable_mosaic.version = 11 : i64} {
  func.func @_gwl_kernel(%arg0: i32, %arg1: i32, %arg2: memref<2x192xf32, #tpu.memory_space<vmem>>, %arg3: memref<192x128xf32, #tpu.memory_space<vmem>>, %arg4: memref<1x128xf32, #tpu.memory_space<vmem>>, %arg5: memref<2x128xf32, #tpu.memory_space<vmem>>) attributes {dimension_semantics = [#tpu.dimension_semantics<parallel>, #tpu.dimension_semantics<arbitrary>], iteration_bounds = array<i64: 1, 1>, scalar_prefetch = 0 : i64, scratch_operands = 0 : i64, tpu.core_type = #tpu.core_type<tc>, window_params = [{transform_indices = @transform_0, window_bounds = array<i64: 2, 192>}, {transform_indices = @transform_1, window_bounds = array<i64: 192, 128>}, {pipeline_mode = #tpu.pipeline_mode<synchronous>, transform_indices = @transform_2, window_bounds = array<i64: 1, 128>}, {transform_indices = @transform_3, window_bounds = array<i64: 2, 128>}]} {
    %c0_i32 = arith.constant 0 : i32
    %0 = arith.cmpi eq, %arg1, %c0_i32 : i32
    %1 = arith.extui %0 : i1 to i32
    %c0_i32_0 = arith.constant 0 : i32
    %2 = arith.cmpi ne, %1, %c0_i32_0 : i32
    scf.if %2 {
      %cst_8 = arith.constant 0.000000e+00 : f32
      %9 = vector.broadcast %cst_8 : f32 to vector<2x128xf32>
      %c0_9 = arith.constant 0 : index
      %c0_10 = arith.constant 0 : index
      %10 = vector.load %arg4[%c0_9, %c0_10] : memref<1x128xf32, #tpu.memory_space<vmem>>, vector<1x128xf32>
      %11 = vector.broadcast %10 : vector<1x128xf32> to vector<2x128xf32>
      %12 = arith.addf %9, %11 : vector<2x128xf32>
      %c0_11 = arith.constant 0 : index
      %c0_12 = arith.constant 0 : index
      %13 = vector.load %arg5[%c0_11, %c0_12] : memref<2x128xf32, #tpu.memory_space<vmem>>, vector<2x128xf32>
      tpu.vector_store %arg5[%c0_11, %c0_12], %12 {strides = array<i32>} : memref<2x128xf32, #tpu.memory_space<vmem>>, vector<2x128xf32>,
    } else {
    }
    %c0 = arith.constant 0 : index
    %c0_1 = arith.constant 0 : index
    %3 = vector.load %arg5[%c0, %c0_1] : memref<2x128xf32, #tpu.memory_space<vmem>>, vector<2x128xf32>
    %c0_2 = arith.constant 0 : index
    %c0_3 = arith.constant 0 : index
    %4 = vector.load %arg2[%c0_2, %c0_3] : memref<2x192xf32, #tpu.memory_space<vmem>>, vector<2x192xf32>
    %c0_4 = arith.constant 0 : index
    %c0_5 = arith.constant 0 : index
    %5 = vector.load %arg3[%c0_4, %c0_5] : memref<192x128xf32, #tpu.memory_space<vmem>>, vector<192x128xf32>
    %cst = arith.constant dense<0.000000e+00> : vector<2x128xf32>
    %6 = tpu.matmul %4, %5, %cst {dimension_numbers = #tpu.dot_dimension_numbers<[1], [0], [0], [1], [0, 0, 1, 1], [], []>} : vector<2x192xf32>, vector<192x128xf32>, vector<2x128xf32> -> vector<2x128xf32>
    %7 = arith.addf %3, %6 : vector<2x128xf32>
    %c0_6 = arith.constant 0 : index
    %c0_7 = arith.constant 0 : index
    %8 = vector.load %arg5[%c0_6, %c0_7] : memref<2x128xf32, #tpu.memory_space<vmem>>, vector<2x128xf32>
    tpu.vector_store %arg5[%c0_6, %c0_7], %7 {strides = array<i32>} : memref<2x128xf32, #tpu.memory_space<vmem>>, vector<2x128xf32>,
    return
  }
  func.func @transform_0(%arg0: i32, %arg1: i32) -> (i32, i32) {
    %c0_i32 = arith.constant 0 : i32
    return %arg0, %arg1 : i32, i32
  }
  func.func @transform_1(%arg0: i32, %arg1: i32) -> (i32, i32) {
    %c0_i32 = arith.constant 0 : i32
    %c0_i32_0 = arith.constant 0 : i32
    return %arg1, %c0_i32 : i32, i32
  }
  func.func @transform_2(%arg0: i32, %arg1: i32) -> (i32, i32) {
    %c0_i32 = arith.constant 0 : i32
    %c0_i32_0 = arith.constant 0 : i32
    %c0_i32_1 = arith.constant 0 : i32
    return %c0_i32, %c0_i32_0 : i32, i32
  }
  func.func @transform_3(%arg0: i32, %arg1: i32) -> (i32, i32) {
    %c0_i32 = arith.constant 0 : i32
    %c0_i32_0 = arith.constant 0 : i32
    return %arg0, %c0_i32 : i32, i32
  }
}

</mosaic_0001>

<bundles_post_ra>
// kernel: groupwise_linear.1
= control target key start
LH: loop header
LB: loop body
LE: loop exit
PB: predicated region body
PF: predicated region fallthrough
CT: control target
= control target key end

     0   :  { %v180_v1 = vmov 0.0   ;;  %vm64_vm0 = vcmask 523264   ;;  %s312_s0 = inlined_call_operand.vmem [shape: f32[2,192], index: 0, kind: input, shape index: {}]   ;;  %s313_s1 = inlined_call_operand.vmem [shape: f32[192,128], index: 1, kind: input, shape index: {}]   ;;  %s314_s2 = inlined_call_operand.vmem [shape: f32[1,128], index: 2, kind: input, shape index: {}]   ;;  %s315_s3 = inlined_call_operand.hbm [shape: f32[2,128], index: 3, kind: output, shape index: {}]  }
   0x1   :  { %v45_v0 = vld [vmem:[%s313_s1 + $0x78] sm:$0xff]  ;;  %67 = vmatprep.subr.mxu0 %v180_v1  ;;  %v44_v2 = vld [vmem:[%s313_s1 + $0x70] sm:$0xff]  ;;  %v43_v3 = vld [vmem:[%s313_s1 + $0x68] sm:$0xff] }
   0x2   :  { %68 = vmatpush1.msra.mxu0 %v45_v0  ;;  %v42_v4 = vld [vmem:[%s313_s1 + $0x60] sm:$0xff]  ;;  %v41_v5 = vld [vmem:[%s313_s1 + $0x58] sm:$0xff]  ;;  %v40_v8 = vld [vmem:[%s313_s1 + $0x50] sm:$0xff] }
   0x3   :  { %69 = vmatprep.subr.mxu0 %v180_v1  ;;  %v224_v6 = vld.sshfl [vmem:[%s312_s0] sm:$0x33 pattern:$0x76325410] }
   0x4   :  { %70 = vmatpush1.msra.mxu0 %v44_v2  ;;  %v153_v7 = vld [vmem:[%s314_s2] ss:$0 sm:$0xff]  ;;  %v62_v9 = vcombine.high %v224_v6, %v224_v6 }
   0x5   :  { %71 = vmatprep.subr.mxu0 %v180_v1  ;;  %27 = vst [vmem:[#allocation2] sm:$0x3] %v153_v7 }
   0x6   :  { %72 = vmatpush1.msra.mxu0 %v43_v3 }
   0x7   :  { %73 = vmatprep.subr.mxu0 %v180_v1 }
   0x8   :  { %74 = vmatpush1.msra.mxu0 %v42_v4 }
   0x9   :  { %75 = vmatprep.subr.mxu0 %v180_v1 }
   0xa   :  { %8 = vsyncpa [#allocation3], 0  ;;  %76 = vmatpush1.msra.mxu0 %v41_v5  ;;  %v39_v10 = vld [vmem:[%s313_s1 + $0x48] sm:$0xff]  ;;  %155 = vmatprep.mubr.msk.f32.mxu0 %vm64_vm0, %v62_v9  ;;  %v38_v11 = vld [vmem:[%s313_s1 + $0x40] sm:$0xff]  ;;  %s181_s6 = smov [#allocation2]  }
   0xb   :  { %77 = vmatprep.subr.mxu0 %v180_v1  ;;  %v37_v12 = vld [vmem:[%s313_s1 + $0x38] sm:$0xff]  ;;  %v36_v13 = vld [vmem:[%s313_s1 + $0x30] sm:$0xff]  ;;  %v35_v14 = vld [vmem:[%s313_s1 + $0x28] sm:$0xff]  ;;  %s145_s7 = sshll.u32 %s181_s6, 4  ;;  %s146_s7 = int_to_ptr.vmem [resolvable:$true] %s145_s7 }
   0xc   :  { %78 = vmatpush1.msra.mxu0 %v40_v8  ;;  %v34_v15 = vld [vmem:[%s313_s1 + $0x20] sm:$0xff]  ;;  %v33_v16 = vld [vmem:[%s313_s1 + $0x18] sm:$0xff]  ;;  %v32_v17 = vld [vmem:[%s313_s1 + $0x10] sm:$0xff]  ;;  %s158_s8 = scalar_lea.vmem %s146_s7, 32  ;;  %p163_p1 = scmp.lt.s32.totalorder %s146_s7, %s146_s7 }
   0xd   :  { %79 = vmatprep.subr.mxu0 %v180_v1  ;;  %v31_v18 = vld [vmem:[%s313_s1 + $0x8] sm:$0xff]  ;;  %v30_v19 = vld [vmem:[%s313_s1] sm:$0xff]  ;;  %v53_v20 = vld [vmem:[%s313_s1 + $0xb8] sm:$0xff]  ;;  %p159_p0 = scmp.ne.s32.totalorder %s146_s7, %s158_s8  ;;  %p164_p2 = scmp.lt.s32.totalorder %s158_s8, %s158_s8 }
   0xe   :  { %80 = vmatpush1.msra.mxu0 %v39_v10  ;;  %v52_v21 = vld [vmem:[%s313_s1 + $0xb0] sm:$0xff]  ;;  %v51_v22 = vld [vmem:[%s313_s1 + $0xa8] sm:$0xff]  ;;  %v50_v23 = vld [vmem:[%s313_s1 + $0xa0] sm:$0xff] }
   0xf   :  { %81 = vmatprep.subr.mxu0 %v180_v1  ;;  %v49_v24 = vld [vmem:[%s313_s1 + $0x98] sm:$0xff]  ;;  %v48_v25 = vld [vmem:[%s313_s1 + $0x90] sm:$0xff]  ;;  %v47_v26 = vld [vmem:[%s313_s1 + $0x88] sm:$0xff]  ;;  %p165_p3 = por %p164_p2, %p163_p1 }
  0x10   :  { %82 = vmatpush1.msra.mxu0 %v38_v11  ;;  %v46_v27 = vld [vmem:[%s313_s1 + $0x80] sm:$0xff] }
  0x11   :  { %83 = vmatprep.subr.mxu0 %v180_v1  ;;  %v28_v28 = vld [vmem:[#allocation2] sm:$0x3]  ;;  %p166_p4 = pnand %p165_p3, %p159_p0 }
  0x12   :  { %84 = vmatpush1.msra.mxu0 %v37_v12 }
  0x13   :  { %85 = vmatprep.subr.mxu0 %v180_v1 }
  0x14   :  { %86 = vmatpush1.msra.mxu0 %v36_v13 }
  0x15   :  { %87 = vmatprep.subr.mxu0 %v180_v1 }
  0x16   :  { %88 = vmatpush1.msra.mxu0 %v35_v14 }
  0x17   :  { %89 = vmatprep.subr.mxu0 %v180_v1 }
  0x18   :  { %90 = vmatpush1.msra.mxu0 %v34_v15 }
  0x19   :  { %91 = vmatprep.subr.mxu0 %v180_v1 }
  0x1a   :  { %92 = vmatpush1.msra.mxu0 %v33_v16 }
  0x1b   :  { %93 = vmatprep.subr.mxu0 %v180_v1 }
  0x1c   :  { %94 = vmatpush1.msra.mxu0 %v32_v17 }
  0x1d   :  { %95 = vmatprep.subr.mxu0 %v180_v1 }
  0x1e   :  { %96 = vmatpush1.msra.mxu0 %v31_v18 }
  0x1f   :  { %97 = vmatprep.subr.mxu0 %v180_v1 }
  0x20   :  { %98 = vmatpush1.msra.mxu0 %v30_v19 }
  0x21   :  { %115 = vmatprep.subr.mxu0 %v180_v1 }
  0x22   :  { %116 = vmatpush2.msra.mxu0 %v53_v20 }
  0x23   :  { %117 = vmatprep.subr.mxu0 %v180_v1 }
  0x24   :  { %118 = vmatpush2.msra.mxu0 %v52_v21 }
  0x25   :  { %119 = vmatprep.subr.mxu0 %v180_v1 }
  0x26   :  { %120 = vmatpush2.msra.mxu0 %v51_v22 }
  0x27   :  { %121 = vmatprep.subr.mxu0 %v180_v1 }
  0x28   :  { %122 = vmatpush2.msra.mxu0 %v50_v23 }
  0x29   :  { %123 = vmatprep.subr.mxu0 %v180_v1 }
  0x2a   :  { %124 = vmatpush2.msra.mxu0 %v49_v24 }
  0x2b   :  { %125 = vmatprep.subr.mxu0 %v180_v1 }
  0x2c   :  { %126 = vmatpush2.msra.mxu0 %v48_v25 }
  0x2d   :  { %127 = vmatprep.subr.mxu0 %v180_v1 }
  0x2e   :  { %128 = vmatpush2.msra.mxu0 %v47_v26 }
  0x2f   :  { %129 = vmatprep.subr.mxu0 %v180_v1 }
  0x30   :  { %130 = vmatpush2.msra.mxu0 %v46_v27 }
  0x31   :  { %132 = vmatmul.mubr.f32.vlgmr.msra.gmra.mxu0 %v224_v6 }
  0xf1   :  { %v133_v29 = vpop.f32.mrf.mxu0 }
  0xf2   :  { %v137_v30 = vadd.f32 %v133_v29, %v28_v28 }
  0xf3   :  { %v135_v31 = vpop.f32.mrf.mxu0 }
  0xf4   :  { %138 = vst [vmem:[#allocation2] sm:$0x3] %v137_v30 }
  0xf5   :  { %169 = shalt.err (!%p166_p4)
}
  0xf6   :  { %148 = dma.vmem_to_hbm [thread:$0]  %s146_s7, 32, %s315_s3, [#allocation3]  }
  0xf7   :  { %178 = dma.done.wait [#allocation3], 32  }
  0xf8   :  { %179 = vsyncadd [#allocation3], 4294967264 }
  0xf9   :  { %152 = vsyncpa [#allocation3], 1 }

</bundles_post_ra>
